<compile_context>
chip_gen: v6e
topology: v6e:2x2x1
jax: 0.10.0
libtpu: 0.0.40
codegen_flags: <defaults>
</compile_context>

<pallas_src>
import math

import jax
import jax.numpy as jnp
from jax.experimental import pallas as pl
from jax.experimental.pallas import tpu as pltpu


def _cdiv(a, b):
    return -(-a // b)


def _round_up(x, m):
    return _cdiv(x, m) * m


def _sublane_multiple(dtype):
    # f32 -> 8 rows / sublane tile, bf16 -> 16, int8 / fp8 -> 32.
    return max(8, 32 // jnp.dtype(dtype).itemsize)


# ---------------------------------------------------------------------------
# Kernel factory: y[i,j] = sum_k x[i,k] * w[k,j] (+ b[j])
# ---------------------------------------------------------------------------
def _make_kernel(has_bias, use_scratch, cast_dtype):
    def kernel(*refs):
        if use_scratch:
            refs, acc_ref = refs[:-1], refs[-1]
        if has_bias:
            x_ref, w_ref, b_ref, o_ref = refs
        else:
            x_ref, w_ref, o_ref = refs
            b_ref = None
        # When the output is f32 we accumulate directly into the resident output
        # block (its block index is constant across k), saving the scratch buffer
        # and the finalize copy/cast.
        acc = acc_ref if use_scratch else o_ref

        k = pl.program_id(2)

        @pl.when(k == 0)
        def _init():
            acc[...] = jnp.zeros_like(acc)

        x = x_ref[...]
        w = w_ref[...]
        if cast_dtype is not None:           # optional bf16 MXU feed, f32 accumulate
            x = x.astype(cast_dtype)
            w = w.astype(cast_dtype)
        acc[...] += jnp.dot(x, w, preferred_element_type=jnp.float32)

        if has_bias or use_scratch:
            @pl.when(k == pl.num_programs(2) - 1)
            def _finalize():
                res = acc[...]
                if has_bias:
                    res = res + b_ref[...].astype(jnp.float32)
                o_ref[...] = res.astype(o_ref.dtype)

    return kernel


def mixed_linear(x, weight, bias=None, *, tm=512, tn=512, tk=None,
                 precision="float32"):
    """Dense MixedLinear forward: y = x @ weight (+ bias)."""
    M, K = x.shape
    Kw, N = weight.shape
    assert K == Kw, "in_features mismatch"
    out_dtype = x.dtype
    has_bias = bias is not None
    use_scratch = jnp.dtype(out_dtype) != jnp.dtype(jnp.float32)
    cast_dtype = None
    if precision == "bfloat16" and jnp.dtype(x.dtype).itemsize > 2:
        cast_dtype = jnp.bfloat16

    sub = _sublane_multiple(x.dtype)
    # Clamp tiles to the (rounded-up) problem, keeping (sublane, 128) alignment.
    tm = _round_up(min(tm, _round_up(M, sub)), sub)
    tn = _round_up(min(tn, _round_up(N, 128)), 128)

    # K (reduction) tiling: keep the whole K resident when small (no padding
    # needed, blocks equal the full K extent); otherwise lane-aligned chunks.
    if tk is None:
        tk = K if K <= 1024 else 512
    if tk < K:
        tk = _round_up(tk, 128)
    if tk >= K:
        tk = K

    # v7x megacore heuristic: make sure the parallel (i, j) grid has >= 2 tiles so
    # both TensorCores get work (only worth it for non-tiny problems).
    if _cdiv(M, tm) * _cdiv(N, tn) < 2:
        if tn >= 256 and N > 128:
            tn = max(128, _round_up(_cdiv(N, 2), 128))
        elif tm >= 2 * sub and M > 8 * sub:
            tm = max(sub, _round_up(_cdiv(M, 2), sub))

    # Only the K axis needs zero padding (and only when the reduction is tiled);
    # M / N edges are handled by Pallas partial blocks (masked edge stores).
    Kp = _round_up(K, tk)
    if Kp != K:
        x = jnp.pad(x, ((0, 0), (0, Kp - K)))
        weight = jnp.pad(weight, ((0, Kp - K), (0, 0)))

    grid = (_cdiv(M, tm), _cdiv(N, tn), Kp // tk)

    in_specs = [
        pl.BlockSpec((tm, tk), lambda i, j, k: (i, k)),   # x tile
        pl.BlockSpec((tk, tn), lambda i, j, k: (k, j)),   # weight tile
    ]
    args = [x, weight]
    if has_bias:
        in_specs.append(pl.BlockSpec((1, tn), lambda i, j, k: (0, j)))  # lane-dense bias
        args.append(bias.reshape(1, N))

    scratch_shapes = []
    if use_scratch:
        scratch_shapes.append(pltpu.VMEM((tm, tn), jnp.float32))

    # VMEM working-set estimate (double-buffered inputs/output + accumulator).
    tk_pad = _round_up(tk, 128)
    vmem_bytes = (
        2 * tm * tk_pad * jnp.dtype(x.dtype).itemsize
        + 2 * tk_pad * tn * jnp.dtype(weight.dtype).itemsize
        + 2 * tm * tn * jnp.dtype(out_dtype).itemsize
        + (2 * tn * jnp.dtype(bias.dtype).itemsize if has_bias else 0)
        + (tm * tn * 4 if use_scratch else 0)
    )
    cp_kwargs = dict(dimension_semantics=("parallel", "parallel", "arbitrary"))
    if vmem_bytes > 14 * 1024 * 1024:
        # Stay within the smallest per-core budget (v7x: 32 MiB scoped of 64 MiB).
        cp_kwargs["vmem_limit_bytes"] = min(int(vmem_bytes * 5 // 4), 32 * 1024 * 1024)

    cost = pl.CostEstimate(
        flops=2 * M * K * N,
        transcendentals=0,
        bytes_accessed=(
            M * K * jnp.dtype(x.dtype).itemsize
            + K * N * jnp.dtype(weight.dtype).itemsize
            + M * N * jnp.dtype(out_dtype).itemsize
            + (N * jnp.dtype(bias.dtype).itemsize if has_bias else 0)
        ),
    )

    return pl.pallas_call(
        _make_kernel(has_bias, use_scratch, cast_dtype),
        out_shape=jax.ShapeDtypeStruct((M, N), out_dtype),
        grid_spec=pltpu.PrefetchScalarGridSpec(
            num_scalar_prefetch=0,
            grid=grid,
            in_specs=in_specs,
            out_specs=pl.BlockSpec((tm, tn), lambda i, j, k: (i, j)),
            scratch_shapes=scratch_shapes,
        ),
        compiler_params=pltpu.CompilerParams(**cp_kwargs),
        cost_estimate=cost,
    )(*args)


# ---------------------------------------------------------------------------
if __name__ == "__main__":
    key = jax.random.PRNGKey(0)
    kx, kw, kb, kx2, kw2, kb2 = jax.random.split(key, 6)

    # Small shapes consistent with the Linear layer: rows x in_features -> out_features.
    M, in_features, out_features = 64, 32, 48
    x = jax.random.normal(kx, (M, in_features), dtype=jnp.float32)
    bound = 1.0 / math.sqrt(out_features)  # kaiming fan_out-ish; exact init irrelevant
    weight = jax.random.uniform(
        kw, (in_features, out_features), minval=-bound, maxval=bound, dtype=jnp.float32
    )
    bias = jax.random.uniform(
        kb, (out_features,), minval=-bound, maxval=bound, dtype=jnp.float32
    )

    out_b = mixed_linear(x, weight, bias)    # addmm path (bias)
    out_nb = mixed_linear(x, weight, None)   # matmul path (no bias)

    # Non-aligned shapes + explicit small tiles to exercise K zero-padding, the
    # tiled K reduction, multi-tile grid and masked M/N edge stores.
    M2, K2, N2 = 300, 200, 260
    x2 = jax.random.normal(kx2, (M2, K2), dtype=jnp.float32)
    w2 = jax.random.normal(kw2, (K2, N2), dtype=jnp.float32) * 0.05
    b2 = jax.random.uniform(kb2, (N2,), minval=-0.1, maxval=0.1, dtype=jnp.float32)
    out2 = mixed_linear(x2, w2, b2, tm=128, tn=128, tk=128)

    # bf16 output path (f32 scratch accumulator + cast at finalize).
    out_bf16 = mixed_linear(
        x.astype(jnp.bfloat16), weight.astype(jnp.bfloat16), bias.astype(jnp.bfloat16)
    )

    jax.block_until_ready((out_b, out_nb, out2, out_bf16))

    # Correctness vs plain-JAX references.
    ref_b = x @ weight + bias[None, :]
    ref_nb = x @ weight
    ref2 = x2 @ w2 + b2[None, :]
    assert out_b.shape == ref_b.shape and out_b.dtype == ref_b.dtype
    assert jnp.allclose(out_b, ref_b, atol=1e-5, rtol=1e-5)
    assert jnp.allclose(out_nb, ref_nb, atol=1e-5, rtol=1e-5)
    assert jnp.allclose(out2, ref2, atol=1e-3, rtol=1e-4)
    assert jnp.allclose(out_bf16.astype(jnp.float32), ref_b, atol=1e-1, rtol=5e-2)

    print("KERNEL_OK")
</pallas_src>

<mosaic_0001>
module attributes {stable_mosaic.version = 11 : i64} {
  func.func @kernel(%arg0: i32, %arg1: i32, %arg2: i32, %arg3: memref<64x32xf32, #tpu.memory_space<vmem>>, %arg4: memref<32x128xf32, #tpu.memory_space<vmem>>, %arg5: memref<1x128xf32, #tpu.memory_space<vmem>>, %arg6: memref<64x128xf32, #tpu.memory_space<vmem>>) attributes {dimension_semantics = [#tpu.dimension_semantics<parallel>, #tpu.dimension_semantics<parallel>, #tpu.dimension_semantics<arbitrary>], iteration_bounds = array<i64: 1, 1, 1>, scalar_prefetch = 0 : i64, scratch_operands = 0 : i64, tpu.core_type = #tpu.core_type<tc>, window_params = [{transform_indices = @transform_0, window_bounds = array<i64: 64, 32>}, {transform_indices = @transform_1, window_bounds = array<i64: 32, 128>}, {transform_indices = @transform_2, window_bounds = array<i64: 1, 128>}, {transform_indices = @transform_3, window_bounds = array<i64: 64, 128>}]} {
    %c0_i32 = arith.constant 0 : i32
    %0 = arith.cmpi eq, %arg2, %c0_i32 : i32
    %1 = arith.extui %0 : i1 to i32
    %c0_i32_0 = arith.constant 0 : i32
    %2 = arith.cmpi ne, %1, %c0_i32_0 : i32
    scf.if %2 {
      %cst_10 = arith.constant 0.000000e+00 : f32
      %12 = vector.broadcast %cst_10 : f32 to vector<64x128xf32>
      %c0_11 = arith.constant 0 : index
      %c0_12 = arith.constant 0 : index
      %13 = vector.load %arg6[%c0_11, %c0_12] : memref<64x128xf32, #tpu.memory_space<vmem>>, vector<64x128xf32>
      tpu.vector_store %arg6[%c0_11, %c0_12], %12 {strides = array<i32>} : memref<64x128xf32, #tpu.memory_space<vmem>>, vector<64x128xf32>,
    } else {
    }
    %c0 = arith.constant 0 : index
    %c0_1 = arith.constant 0 : index
    %3 = vector.load %arg3[%c0, %c0_1] : memref<64x32xf32, #tpu.memory_space<vmem>>, vector<64x32xf32>
    %c0_2 = arith.constant 0 : index
    %c0_3 = arith.constant 0 : index
    %4 = vector.load %arg4[%c0_2, %c0_3] : memref<32x128xf32, #tpu.memory_space<vmem>>, vector<32x128xf32>
    %c0_4 = arith.constant 0 : index
    %c0_5 = arith.constant 0 : index
    %5 = vector.load %arg6[%c0_4, %c0_5] : memref<64x128xf32, #tpu.memory_space<vmem>>, vector<64x128xf32>
    %cst = arith.constant dense<0.000000e+00> : vector<64x128xf32>
    %6 = tpu.matmul %3, %4, %cst {dimension_numbers = #tpu.dot_dimension_numbers<[1], [0], [0], [1], [0, 0, 1, 1], [], []>} : vector<64x32xf32>, vector<32x128xf32>, vector<64x128xf32> -> vector<64x128xf32>
    %7 = arith.addf %5, %6 : vector<64x128xf32>
    %c0_6 = arith.constant 0 : index
    %c0_7 = arith.constant 0 : index
    %8 = vector.load %arg6[%c0_6, %c0_7] : memref<64x128xf32, #tpu.memory_space<vmem>>, vector<64x128xf32>
    tpu.vector_store %arg6[%c0_6, %c0_7], %7 {strides = array<i32>} : memref<64x128xf32, #tpu.memory_space<vmem>>, vector<64x128xf32>,
    %c0_i32_8 = arith.constant 0 : i32
    %9 = arith.cmpi eq, %arg2, %c0_i32_8 : i32
    %10 = arith.extui %9 : i1 to i32
    %c0_i32_9 = arith.constant 0 : i32
    %11 = arith.cmpi ne, %10, %c0_i32_9 : i32
    scf.if %11 {
      %c0_10 = arith.constant 0 : index
      %c0_11 = arith.constant 0 : index
      %12 = vector.load %arg6[%c0_10, %c0_11] : memref<64x128xf32, #tpu.memory_space<vmem>>, vector<64x128xf32>
      %c0_12 = arith.constant 0 : index
      %c0_13 = arith.constant 0 : index
      %13 = vector.load %arg5[%c0_12, %c0_13] : memref<1x128xf32, #tpu.memory_space<vmem>>, vector<1x128xf32>
      %14 = vector.broadcast %13 : vector<1x128xf32> to vector<64x128xf32>
      %15 = arith.addf %12, %14 : vector<64x128xf32>
      %c0_14 = arith.constant 0 : index
      %c0_15 = arith.constant 0 : index
      %16 = vector.load %arg6[%c0_14, %c0_15] : memref<64x128xf32, #tpu.memory_space<vmem>>, vector<64x128xf32>
      tpu.vector_store %arg6[%c0_14, %c0_15], %15 {strides = array<i32>} : memref<64x128xf32, #tpu.memory_space<vmem>>, vector<64x128xf32>,
    } else {
    }
    return
  }
  func.func @transform_0(%arg0: i32, %arg1: i32, %arg2: i32) -> (i32, i32) {
    %c0_i32 = arith.constant 0 : i32
    return %arg0, %arg2 : i32, i32
  }
  func.func @transform_1(%arg0: i32, %arg1: i32, %arg2: i32) -> (i32, i32) {
    %c0_i32 = arith.constant 0 : i32
    return %arg2, %arg1 : i32, i32
  }
  func.func @transform_2(%arg0: i32, %arg1: i32, %arg2: i32) -> (i32, i32) {
    %c0_i32 = arith.constant 0 : i32
    %c0_i32_0 = arith.constant 0 : i32
    return %c0_i32, %arg1 : i32, i32
  }
  func.func @transform_3(%arg0: i32, %arg1: i32, %arg2: i32) -> (i32, i32) {
    %c0_i32 = arith.constant 0 : i32
    return %arg0, %arg1 : i32, i32
  }
}

</mosaic_0001>

<bundles_post_ra>
// kernel: tpu_custom_call.1
= control target key start
LH: loop header
LB: loop body
LE: loop exit
PB: predicated region body
PF: predicated region fallthrough
CT: control target
= control target key end

     0   :  { %vm46_vm0 = vcmask 261120   ;;  %s371_s1 = inlined_call_operand.vmem [shape: f32[32,48], index: 1, kind: input, shape index: {}]   ;;  %s372_s0 = inlined_call_operand.vmem [shape: f32[64,32], index: 0, kind: input, shape index: {}]   ;;  %s373_s2 = inlined_call_operand.vmem [shape: f32[1,48], index: 2, kind: input, shape index: {}]   ;;  %s374_s3 = inlined_call_operand.vmem [shape: f32[64,48], index: 3, kind: output, shape index: {}]  }
   0x1   :  { %v37_v0 = vld [vmem:[%s371_s1 + $0x18] sm:$0xff]  ;;  %v36_v1 = vld [vmem:[%s371_s1 + $0x10] sm:$0xff]  ;;  %v35_v2 = vld [vmem:[%s371_s1 + $0x8] sm:$0xff] }
   0x2   :  { %251 = vmatprep.subr.mxu0 %v37_v0  ;;  %271 = vmatprep.subr.mxu1 %v37_v0  ;;  %v34_v3 = vld [vmem:[%s371_s1] sm:$0xff]  ;;  %v27_v6 = vld [vmem:[%s372_s0 + $0x8] sm:$0xff]  ;;  %v28_v8 = vld [vmem:[%s372_s0 + $0x10] sm:$0xff] }
   0x3   :  { %252 = vmatpush3.msra.mxu0 %v37_v0  ;;  %275 = vmatpush3.msra.mxu1 %v37_v0  ;;  %v26_v4 = vld [vmem:[%s372_s0] sm:$0xff]  ;;  %v31_v7 = vld [vmem:[%s372_s0 + $0x28] sm:$0xff]  ;;  %v32_v9 = vld [vmem:[%s372_s0 + $0x30] sm:$0xff] }
   0x4   :  { %253 = vmatprep.subr.mxu0 %v36_v1  ;;  %272 = vmatprep.subr.mxu1 %v36_v1  ;;  %v30_v5 = vld [vmem:[%s372_s0 + $0x20] sm:$0xff]  ;;  %v29_v10 = vld [vmem:[%s372_s0 + $0x18] sm:$0xff] }
   0x5   :  { %254 = vmatpush3.msra.mxu0 %v36_v1  ;;  %276 = vmatpush3.msra.mxu1 %v36_v1  ;;  %v33_v11 = vld [vmem:[%s372_s0 + $0x38] sm:$0xff]  ;;  %v238_v13 = vld [vmem:[%s373_s2] ss:$0 sm:$0xff] }
   0x6   :  { %255 = vmatprep.subr.mxu0 %v35_v2  ;;  %273 = vmatprep.subr.mxu1 %v35_v2 }
   0x7   :  { %256 = vmatpush3.msra.mxu0 %v35_v2  ;;  %277 = vmatpush3.msra.mxu1 %v35_v2 }
   0x8   :  { %257 = vmatprep.subr.mxu0 %v34_v3  ;;  %274 = vmatprep.subr.mxu1 %v34_v3 }
   0x9   :  { %258 = vmatpush3.msra.mxu0 %v34_v3  ;;  %278 = vmatpush3.msra.mxu1 %v34_v3 }
   0xa   :  { %259 = vmatprep.mubr.msk.f32.mxu0 %vm46_vm0, %v26_v4  ;;  %265 = vmatprep.mubr.msk.f32.mxu1 %vm46_vm0, %v30_v5 }
   0xb   :  { %260 = vmatmul.mubr.msk.f32.vlgmr.msra.gmra.mxu0 %vm46_vm0, %v27_v6  ;;  %266 = vmatmul.mubr.msk.f32.vlgmr.msra.gmra.mxu1 %vm46_vm0, %v31_v7 }
   0xc   :  { %262 = vmatprep.mubr.msk.f32.mxu0 %vm46_vm0, %v28_v8  ;;  %268 = vmatprep.mubr.msk.f32.mxu1 %vm46_vm0, %v32_v9 }
   0xf   :  { %263 = vmatmul.mubr.msk.f32.gmra.mxu0 %vm46_vm0, %v29_v10  ;;  %269 = vmatmul.mubr.msk.f32.gmra.mxu1 %vm46_vm0, %v33_v11 }
  0xcb   :  { %v261_v12 = vpop.f32.mrf.mxu0  ;;  %v267_v14 = vpop.f32.mrf.mxu1 }
  0xcc   :  { %v211_v17 = vadd.f32 %v261_v12, %v238_v13  ;;  %v215_v18 = vadd.f32 %v267_v14, %v238_v13 }
  0xcd   :  { %v137_v15 = vpop.f32.mrf.mxu0  ;;  %v157_v16 = vpop.f32.mrf.mxu1 }
  0xce   :  { %219 = vst [vmem:[%s374_s3 + $0x8] sm:$0xff] %v211_v17  ;;  %223 = vst [vmem:[%s374_s3 + $0x28] sm:$0xff] %v215_v18  ;;  %v210_v21 = vadd.f32 %v238_v13, %v137_v15  ;;  %v214_v22 = vadd.f32 %v238_v13, %v157_v16 }
  0xcf   :  { %v264_v19 = vpop.f32.mrf.mxu0  ;;  %v270_v20 = vpop.f32.mrf.mxu1 }
  0xd0   :  { %218 = vst [vmem:[%s374_s3] sm:$0xff] %v210_v21  ;;  %222 = vst [vmem:[%s374_s3 + $0x20] sm:$0xff] %v214_v22  ;;  %v213_v25 = vadd.f32 %v264_v19, %v238_v13  ;;  %v217_v26 = vadd.f32 %v270_v20, %v238_v13 }
  0xd1   :  { %v147_v23 = vpop.f32.mrf.mxu0  ;;  %v167_v24 = vpop.f32.mrf.mxu1 }
  0xd2   :  { %221 = vst [vmem:[%s374_s3 + $0x18] sm:$0xff] %v213_v25  ;;  %225 = vst [vmem:[%s374_s3 + $0x38] sm:$0xff] %v217_v26  ;;  %v212_v27 = vadd.f32 %v238_v13, %v147_v23  ;;  %v216_v28 = vadd.f32 %v238_v13, %v167_v24 }
  0xd4   :  { %220 = vst [vmem:[%s374_s3 + $0x10] sm:$0xff] %v212_v27  ;;  %224 = vst [vmem:[%s374_s3 + $0x30] sm:$0xff] %v216_v28 }

</bundles_post_ra>
